<compile_context>
chip_gen: v7x
topology: tpu7x:2x2x1
jax: 0.10.0
libtpu: 0.0.40
codegen_flags: <defaults>
</compile_context>

<pallas_src>
import functools

import jax
import jax.numpy as jnp
from jax.experimental import pallas as pl
from jax.experimental.pallas import tpu as pltpu


def _round_up(x, m):
    return ((x + m - 1) // m) * m


# ----------------------------------------------------------------------------
# Fused Pallas matmul kernel (MXU):  out = act_out(A @ W + bias)
# ----------------------------------------------------------------------------
def _matmul_kernel(a_ref, b_ref, bias_ref, o_ref, acc_ref, *, act_out):
    @pl.when(pl.program_id(2) == 0)
    def _():
        acc_ref[...] = jnp.zeros_like(acc_ref)

    acc_ref[...] += jnp.dot(a_ref[...], b_ref[...],
                            preferred_element_type=jnp.float32)

    @pl.when(pl.program_id(2) == pl.num_programs(2) - 1)
    def _():
        y = acc_ref[...] + bias_ref[...]          # (1, tn) broadcasts over rows
        if act_out == "relu":
            y = jnp.maximum(y, 0.0)
        elif act_out == "sigmoid10":              # hypernetwork Sigmoid(10 * x)
            y = 1.0 / (1.0 + jnp.exp(-10.0 * y))
        o_ref[...] = y.astype(o_ref.dtype)


def pallas_matmul_fused(a, w, bias=None, act_out="none",
                        out_dtype=jnp.bfloat16, tm=256, tn=256, tk=512):
    """(M, K) @ (K, N) + bias, f32 accumulation, bf16 MXU operands."""
    M, K = a.shape
    K2, N = w.shape
    assert K == K2
    a = a.astype(jnp.bfloat16)
    w = w.astype(jnp.bfloat16)
    bias = jnp.zeros((N,), jnp.float32) if bias is None else bias.astype(jnp.float32)

    tm_e = min(tm, _round_up(M, 16))
    tn_e = min(tn, _round_up(N, 128))
    # Small / non-128-multiple K: use one full-extent K block (exempt from the
    # (8,128) divisibility rule) instead of padding K 8x.
    tk_e = K if (K % 128 != 0) else min(tk, K)
    Mp, Np, Kp = _round_up(M, tm_e), _round_up(N, tn_e), _round_up(K, tk_e)

    if (Mp, Kp) != (M, K):
        a = jnp.pad(a, ((0, Mp - M), (0, Kp - K)))
    if (Kp, Np) != (K, N):
        w = jnp.pad(w, ((0, Kp - K), (0, Np - N)))
    bias2 = jnp.pad(bias.reshape(1, N), ((0, 0), (0, Np - N)))

    out = pl.pallas_call(
        functools.partial(_matmul_kernel, act_out=act_out),
        out_shape=jax.ShapeDtypeStruct((Mp, Np), out_dtype),
        grid_spec=pltpu.PrefetchScalarGridSpec(
            num_scalar_prefetch=0,
            grid=(Mp // tm_e, Np // tn_e, Kp // tk_e),
            in_specs=[pl.BlockSpec((tm_e, tk_e), lambda i, j, k: (i, k)),
                      pl.BlockSpec((tk_e, tn_e), lambda i, j, k: (k, j)),
                      pl.BlockSpec((1, tn_e), lambda i, j, k: (0, j))],
            out_specs=pl.BlockSpec((tm_e, tn_e), lambda i, j, k: (i, j)),
            scratch_shapes=[pltpu.VMEM((tm_e, tn_e), jnp.float32)]),
        compiler_params=pltpu.CompilerParams(
            dimension_semantics=("parallel", "parallel", "arbitrary")),
    )(a, w, bias2)
    return out[:M, :N]


# ----------------------------------------------------------------------------
# Weight preparation (done ONCE at init, not per forward call)
# ----------------------------------------------------------------------------
def prep_down_weight(w):
    """PyTorch Conv2d weight (Cout, Cin, 4, 4) -> (16*Cin, Cout) GEMM matrix,
    K ordered as (kh, kw, ci)."""
    Cout, Cin = w.shape[0], w.shape[1]
    return w.transpose(2, 3, 1, 0).reshape(16 * Cin, Cout).astype(jnp.bfloat16)


# kernel-tap index used by (output phase, 2x2 window offset) along each axis
_PHASE_TAPS = ((3, 1), (2, 0))


def prep_up_weight(w):
    """PyTorch ConvTranspose2d weight (Cin, Cout, 4, 4) -> packed sub-pixel GEMM
    matrix (4*Cin, 4*Cout); K = (win_oh, win_ow, ci), N = (phase_h, phase_w, co)."""
    k_blocks = []
    for oh in (0, 1):
        for ow in (0, 1):
            n_blocks = [w[:, :, _PHASE_TAPS[ph][oh], _PHASE_TAPS[pw][ow]]
                        for ph in (0, 1) for pw in (0, 1)]
            k_blocks.append(jnp.concatenate(n_blocks, axis=1))   # (Cin, 4*Cout)
    return jnp.concatenate(k_blocks, axis=0).astype(jnp.bfloat16)


# ----------------------------------------------------------------------------
# Conv2d / ConvTranspose2d (k=4, s=2, p=1) in NHWC, GEMM-based
# ----------------------------------------------------------------------------
def conv2d_s2_nhwc(x, wm, bias=None, act_in=None, act_out="none",
                   out_dtype=jnp.bfloat16):
    """Conv2d(Cin, Cout, 4, stride=2, padding=1).  x: (B,H,W,Cin), wm: (16*Cin,Cout)."""
    B, H, W, Cin = x.shape
    Ho, Wo = H // 2, W // 2
    Cout = wm.shape[1]
    if act_in == "lrelu":          # folded into the XLA im2col gather, no extra HBM pass
        x = jnp.where(x >= 0, x, 0.2 * x)
    elif act_in == "relu":
        x = jnp.maximum(x, 0)
    xp = jnp.pad(x, ((0, 0), (1, 1), (1, 1), (0, 0)))
    cols = [xp[:, kh:kh + 2 * Ho:2, kw:kw + 2 * Wo:2, :]
            for kh in range(4) for kw in range(4)]
    a = jnp.concatenate(cols, axis=-1).reshape(B * Ho * Wo, 16 * Cin)
    y = pallas_matmul_fused(a, wm, bias, act_out, out_dtype)
    return y.reshape(B, Ho, Wo, Cout)


def conv_transpose2d_s2_nhwc(x, wm, bias=None, act_in=None, act_out="none",
                             out_dtype=jnp.bfloat16):
    """ConvTranspose2d(Cin, Cout, 4, stride=2, padding=1) as a sub-pixel GEMM:
    one (B*(H+1)*(W+1), 4*Cin) @ (4*Cin, 4*Cout) matmul + pixel shuffle of the
    4 output phases.  No zero-dilated input, no wasted MXU FLOPs."""
    B, H, W, Cin = x.shape
    Cout = wm.shape[1] // 4
    if act_in == "relu":
        x = jnp.maximum(x, 0)
    xp = jnp.pad(x, ((0, 0), (1, 1), (1, 1), (0, 0)))            # (B, H+2, W+2, Cin)
    cols = [xp[:, oh:oh + H + 1, ow:ow + W + 1, :]
            for oh in (0, 1) for ow in (0, 1)]
    a = jnp.concatenate(cols, axis=-1).reshape(B * (H + 1) * (W + 1), 4 * Cin)
    y = pallas_matmul_fused(a, wm, bias, act_out, out_dtype)
    y = y.reshape(B, H + 1, W + 1, 2, 2, Cout)
    # phase (ph, pw) at output base (i, j) lives in GEMM row (i+ph, j+pw)
    p00 = y[:, 0:H,     0:W,     0, 0, :]
    p01 = y[:, 0:H,     1:W + 1, 0, 1, :]
    p10 = y[:, 1:H + 1, 0:W,     1, 0, :]
    p11 = y[:, 1:H + 1, 1:W + 1, 1, 1, :]
    row0 = jnp.stack([p00, p01], axis=3)
    row1 = jnp.stack([p10, p11], axis=3)
    out = jnp.stack([row0, row1], axis=2)                        # (B, H, 2, W, 2, C)
    return out.reshape(B, 2 * H, 2 * W, Cout)


# ----------------------------------------------------------------------------
# Final fusion: 0.5 * (sigmoid(10*unet) + sigmoid(bias_param)), tiled kernel,
# bias broadcast over batch via the index_map (no B-x bias tensor in HBM).
# sigmoid(10*unet) was already fused into the last GEMM's epilogue.
# ----------------------------------------------------------------------------
def _combine_kernel(cd_ref, bias_ref, o_ref):
    o_ref[...] = 0.5 * (cd_ref[...] + 1.0 / (1.0 + jnp.exp(-bias_ref[...])))


def final_combine(cd, bias_img):
    B = cd.shape[0]
    n = cd.shape[1] * cd.shape[2] * cd.shape[3]
    LANE = 128
    rows = pl.cdiv(n, LANE)
    rt = min(256, _round_up(rows, 8))
    rows_p = _round_up(rows, rt)
    pad = rows_p * LANE - n
    cd2 = jnp.pad(cd.reshape(B, n).astype(jnp.float32),
                  ((0, 0), (0, pad))).reshape(B, rows_p, LANE)
    b2 = jnp.pad(bias_img.reshape(1, n).astype(jnp.float32),
                 ((0, 0), (0, pad))).reshape(1, rows_p, LANE)
    out = pl.pallas_call(
        _combine_kernel,
        out_shape=jax.ShapeDtypeStruct((B, rows_p, LANE), jnp.float32),
        grid=(B, rows_p // rt),
        in_specs=[pl.BlockSpec((1, rt, LANE), lambda b, r: (b, r, 0)),
                  pl.BlockSpec((1, rt, LANE), lambda b, r: (0, r, 0))],
        out_specs=pl.BlockSpec((1, rt, LANE), lambda b, r: (b, r, 0)),
        compiler_params=pltpu.CompilerParams(
            dimension_semantics=("parallel", "arbitrary")),
    )(cd2, b2)
    return out.reshape(B, rows_p * LANE)[:, :n].reshape(cd.shape)


# ----------------------------------------------------------------------------
# pix2pix UnetGenerator (norm='none', no dropout, final Tanh -> Identity)
# ----------------------------------------------------------------------------
def build_unet_cfg(input_nc, output_nc, num_downs, ngf):
    assert num_downs >= 5
    cfgs = [dict(outer_nc=output_nc, inner_nc=ngf, input_nc=input_nc,
                 outermost=True, innermost=False),
            dict(outer_nc=ngf, inner_nc=ngf * 2, input_nc=ngf,
                 outermost=False, innermost=False),
            dict(outer_nc=ngf * 2, inner_nc=ngf * 4, input_nc=ngf * 2,
                 outermost=False, innermost=False),
            dict(outer_nc=ngf * 4, inner_nc=ngf * 8, input_nc=ngf * 4,
                 outermost=False, innermost=False)]
    for _ in range(num_downs - 5):
        cfgs.append(dict(outer_nc=ngf * 8, inner_nc=ngf * 8, input_nc=ngf * 8,
                         outermost=False, innermost=False))
    cfgs.append(dict(outer_nc=ngf * 8, inner_nc=ngf * 8, input_nc=ngf * 8,
                     outermost=False, innermost=True))
    return cfgs


def init_unet_params(key, cfgs):
    # init_type='normal', init_gain=0.02.  norm='none' -> use_bias=False for the
    # down convs and the inner up convs; only the outermost up conv has a bias.
    params = []
    for cfg in cfgs:
        key, k1, k2, k3 = jax.random.split(key, 4)
        down_w = 0.02 * jax.random.normal(
            k1, (cfg['inner_nc'], cfg['input_nc'], 4, 4), jnp.float32)
        if cfg['outermost']:
            up_in = cfg['inner_nc'] * 2
            up_b = 0.02 * jax.random.normal(k3, (cfg['outer_nc'],), jnp.float32)
        elif cfg['innermost']:
            up_in = cfg['inner_nc']
            up_b = None
        else:
            up_in = cfg['inner_nc'] * 2
            up_b = None
        up_w = 0.02 * jax.random.normal(
            k2, (up_in, cfg['outer_nc'], 4, 4), jnp.float32)
        params.append(dict(
            down_wm=prep_down_weight(down_w),                 # (16*Cin, Cout) bf16
            up_wm=prep_up_weight(up_w),                       # (4*Cin, 4*Cout) bf16
            up_bias=None if up_b is None else jnp.tile(up_b, 4)))  # packed (4*Cout,)
    return params, key


def unet_apply(x, cfgs, params, idx=0):
    cfg, p = cfgs[idx], params[idx]
    if cfg['outermost']:
        d = conv2d_s2_nhwc(x, p['down_wm'])                    # no act / no norm / no bias
        s = unet_apply(d, cfgs, params, idx + 1)
        # uprelu folded into the im2col; upconv bias + (Tanh->Identity) + the
        # hypernetwork's Sigmoid(10*x) fused into the GEMM epilogue.
        return conv_transpose2d_s2_nhwc(s, p['up_wm'], p['up_bias'],
                                        act_in='relu', act_out='sigmoid10',
                                        out_dtype=jnp.float32)
    elif cfg['innermost']:
        # LeakyReLU folded into im2col; the following ReLU fused into this
        # down conv's epilogue (its output feeds only the up conv).
        d = conv2d_s2_nhwc(x, p['down_wm'], act_in='lrelu', act_out='relu')
        y = conv_transpose2d_s2_nhwc(d, p['up_wm'])
        return jnp.concatenate([x, y], axis=-1)                # channel-last skip
    else:
        d = conv2d_s2_nhwc(x, p['down_wm'], act_in='lrelu')    # downnorm = Identity
        s = unet_apply(d, cfgs, params, idx + 1)
        y = conv_transpose2d_s2_nhwc(s, p['up_wm'], act_in='relu')  # upnorm = Identity
        return jnp.concatenate([x, y], axis=-1)


# ----------------------------------------------------------------------------
# UnetHyperNetwork forward (distortion_img_type='image', add_bias_to_unet=True)
# ----------------------------------------------------------------------------
def unet_hypernetwork_forward(inputs, unet_params, bias_param, cfgs):
    # NCHW -> NHWC once at the module boundary; bf16 activations inside.
    x = jnp.transpose(inputs, (0, 2, 3, 1)).astype(jnp.bfloat16)
    cd = unet_apply(x, cfgs, unet_params)          # == Sigmoid(10 * model(inputs)), f32
    # TODO(synk): OptimizableImage internals are not in the reference; modelled
    # here as get_image() = sigmoid(learned_param) of shape (1, 3, H, W).
    bias_nhwc = jnp.transpose(bias_param, (0, 2, 3, 1))
    out = final_combine(cd, bias_nhwc)             # 0.5*(cd + sigmoid(bias)), batch-bcast
    return jnp.transpose(out, (0, 3, 1, 2))        # back to NCHW


# ----------------------------------------------------------------------------
# Pure-lax references used for a small building-block self-check
# ----------------------------------------------------------------------------
def _ref_conv2d_s2(x_nhwc, w_pt):                  # w_pt: (Cout, Cin, 4, 4)
    w_hwio = jnp.transpose(w_pt, (2, 3, 1, 0))
    return jax.lax.conv_general_dilated(
        x_nhwc, w_hwio, window_strides=(2, 2), padding=((1, 1), (1, 1)),
        dimension_numbers=("NHWC", "HWIO", "NHWC"))


def _ref_conv_transpose2d_s2(x_nhwc, w_pt):        # w_pt: (Cin, Cout, 4, 4)
    w_hwio = jnp.transpose(w_pt[:, :, ::-1, ::-1], (2, 3, 0, 1))
    return jax.lax.conv_general_dilated(
        x_nhwc, w_hwio, window_strides=(1, 1), padding=((2, 2), (2, 2)),
        lhs_dilation=(2, 2), dimension_numbers=("NHWC", "HWIO", "NHWC"))


if __name__ == "__main__":
    # small-shape config consistent with the module ('image' + 'mask' branch):
    # n_inputs = 1, n_outputs = 3, U-Net at reduced scale.
    B, IN_C, OUT_C = 2, 1, 3
    IMG = 32          # real module uses 384/448/512; 32 keeps the demo small
    NUM_DOWNS = 5     # real unet_128 uses 7
    NGF = 8           # real module uses 64

    key = jax.random.PRNGKey(0)

    # -- building-block self-check against lax convolutions --------------------
    key, ka, kw1, kw2 = jax.random.split(key, 4)
    xt = jax.random.normal(ka, (2, 8, 8, 8), jnp.float32)
    wd = jax.random.normal(kw1, (16, 8, 4, 4), jnp.float32)   # Conv2d weight
    wu = jax.random.normal(kw2, (8, 16, 4, 4), jnp.float32)   # ConvTranspose2d weight
    # round everything to bf16 so the only difference vs. lax is summation order
    xt = xt.astype(jnp.bfloat16).astype(jnp.float32)
    wd = wd.astype(jnp.bfloat16).astype(jnp.float32)
    wu = wu.astype(jnp.bfloat16).astype(jnp.float32)
    got_d = conv2d_s2_nhwc(xt, prep_down_weight(wd), out_dtype=jnp.float32)
    got_u = conv_transpose2d_s2_nhwc(xt, prep_up_weight(wu), out_dtype=jnp.float32)
    assert jnp.allclose(got_d, _ref_conv2d_s2(xt, wd), atol=1e-2, rtol=1e-2)
    assert jnp.allclose(got_u, _ref_conv_transpose2d_s2(xt, wu), atol=1e-2, rtol=1e-2)

    # -- full forward -----------------------------------------------------------
    cfgs = build_unet_cfg(IN_C, OUT_C, NUM_DOWNS, NGF)
    unet_params, key = init_unet_params(key, cfgs)
    key, kb, kx = jax.random.split(key, 3)
    bias_param = 0.02 * jax.random.normal(kb, (1, OUT_C, IMG, IMG), jnp.float32)
    inputs = jax.random.normal(kx, (B, IN_C, IMG, IMG), jnp.float32)

    fwd = jax.jit(functools.partial(unet_hypernetwork_forward, cfgs=cfgs))
    out = jax.block_until_ready(fwd(inputs, unet_params, bias_param))

    assert out.shape == (B, OUT_C, IMG, IMG), out.shape
    assert bool(jnp.all(jnp.isfinite(out)))
    print("KERNEL_OK")
</pallas_src>

<mosaic_0001>
module attributes {stable_mosaic.version = 11 : i64} {
  func.func @_matmul_kernel(%arg0: i32, %arg1: i32, %arg2: i32, %arg3: memref<32x128xbf16, #tpu.memory_space<vmem>>, %arg4: memref<128x128xbf16, #tpu.memory_space<vmem>>, %arg5: memref<1x128xf32, #tpu.memory_space<vmem>>, %arg6: memref<32x128xf32, #tpu.memory_space<vmem>>, %arg7: memref<32x128xf32, #tpu.memory_space<vmem>>) attributes {dimension_semantics = [#tpu.dimension_semantics<parallel>, #tpu.dimension_semantics<parallel>, #tpu.dimension_semantics<arbitrary>], iteration_bounds = array<i64: 1, 1, 1>, scalar_prefetch = 0 : i64, scratch_operands = 1 : i64, tpu.core_type = #tpu.core_type<tc>, window_params = [{transform_indices = @transform_0, window_bounds = array<i64: 32, 128>}, {transform_indices = @transform_1, window_bounds = array<i64: 128, 128>}, {transform_indices = @transform_2, window_bounds = array<i64: 1, 128>}, {transform_indices = @transform_3, window_bounds = array<i64: 32, 128>}]} {
    %c0_i32 = arith.constant 0 : i32
    %0 = arith.cmpi eq, %arg2, %c0_i32 : i32
    %1 = arith.extui %0 : i1 to i32
    %c0_i32_0 = arith.constant 0 : i32
    %2 = arith.cmpi ne, %1, %c0_i32_0 : i32
    scf.if %2 {
      %cst_10 = arith.constant 0.000000e+00 : f32
      %12 = vector.broadcast %cst_10 : f32 to vector<32x128xf32>
      %c0_11 = arith.constant 0 : index
      %c0_12 = arith.constant 0 : index
      %13 = vector.load %arg7[%c0_11, %c0_12] : memref<32x128xf32, #tpu.memory_space<vmem>>, vector<32x128xf32>
      tpu.vector_store %arg7[%c0_11, %c0_12], %12 {strides = array<i32>} : memref<32x128xf32, #tpu.memory_space<vmem>>, vector<32x128xf32>,
    } else {
    }
    %c0 = arith.constant 0 : index
    %c0_1 = arith.constant 0 : index
    %3 = vector.load %arg7[%c0, %c0_1] : memref<32x128xf32, #tpu.memory_space<vmem>>, vector<32x128xf32>
    %c0_2 = arith.constant 0 : index
    %c0_3 = arith.constant 0 : index
    %4 = vector.load %arg3[%c0_2, %c0_3] : memref<32x128xbf16, #tpu.memory_space<vmem>>, vector<32x128xbf16>
    %c0_4 = arith.constant 0 : index
    %c0_5 = arith.constant 0 : index
    %5 = vector.load %arg4[%c0_4, %c0_5] : memref<128x128xbf16, #tpu.memory_space<vmem>>, vector<128x128xbf16>
    %cst = arith.constant dense<0.000000e+00> : vector<32x128xf32>
    %6 = tpu.matmul %4, %5, %cst {dimension_numbers = #tpu.dot_dimension_numbers<[1], [0], [0], [1], [0, 0, 1, 1], [], []>} : vector<32x128xbf16>, vector<128x128xbf16>, vector<32x128xf32> -> vector<32x128xf32>
    %7 = arith.addf %3, %6 : vector<32x128xf32>
    %c0_6 = arith.constant 0 : index
    %c0_7 = arith.constant 0 : index
    %8 = vector.load %arg7[%c0_6, %c0_7] : memref<32x128xf32, #tpu.memory_space<vmem>>, vector<32x128xf32>
    tpu.vector_store %arg7[%c0_6, %c0_7], %7 {strides = array<i32>} : memref<32x128xf32, #tpu.memory_space<vmem>>, vector<32x128xf32>,
    %c0_i32_8 = arith.constant 0 : i32
    %9 = arith.cmpi eq, %arg2, %c0_i32_8 : i32
    %10 = arith.extui %9 : i1 to i32
    %c0_i32_9 = arith.constant 0 : i32
    %11 = arith.cmpi ne, %10, %c0_i32_9 : i32
    scf.if %11 {
      %c0_10 = arith.constant 0 : index
      %c0_11 = arith.constant 0 : index
      %12 = vector.load %arg7[%c0_10, %c0_11] : memref<32x128xf32, #tpu.memory_space<vmem>>, vector<32x128xf32>
      %c0_12 = arith.constant 0 : index
      %c0_13 = arith.constant 0 : index
      %13 = vector.load %arg5[%c0_12, %c0_13] : memref<1x128xf32, #tpu.memory_space<vmem>>, vector<1x128xf32>
      %14 = vector.broadcast %13 : vector<1x128xf32> to vector<32x128xf32>
      %15 = arith.addf %12, %14 : vector<32x128xf32>
      %c0_14 = arith.constant 0 : index
      %c0_15 = arith.constant 0 : index
      %16 = vector.load %arg6[%c0_14, %c0_15] : memref<32x128xf32, #tpu.memory_space<vmem>>, vector<32x128xf32>
      tpu.vector_store %arg6[%c0_14, %c0_15], %15 {strides = array<i32>} : memref<32x128xf32, #tpu.memory_space<vmem>>, vector<32x128xf32>,
    } else {
    }
    return
  }
  func.func @transform_0(%arg0: i32, %arg1: i32, %arg2: i32) -> (i32, i32) {
    %c0_i32 = arith.constant 0 : i32
    return %arg0, %arg2 : i32, i32
  }
  func.func @transform_1(%arg0: i32, %arg1: i32, %arg2: i32) -> (i32, i32) {
    %c0_i32 = arith.constant 0 : i32
    return %arg2, %arg1 : i32, i32
  }
  func.func @transform_2(%arg0: i32, %arg1: i32, %arg2: i32) -> (i32, i32) {
    %c0_i32 = arith.constant 0 : i32
    %c0_i32_0 = arith.constant 0 : i32
    return %c0_i32, %arg1 : i32, i32
  }
  func.func @transform_3(%arg0: i32, %arg1: i32, %arg2: i32) -> (i32, i32) {
    %c0_i32 = arith.constant 0 : i32
    return %arg0, %arg1 : i32, i32
  }
}

</mosaic_0001>

<bundles_post_ra>
// kernel: tpu_custom_call.1
= control target key start
LH: loop header
LB: loop body
LE: loop exit
PB: predicated region body
PF: predicated region fallthrough
CT: control target
= control target key end

     0   :  { %8 = vsyncpa [#allocation4], 0  ;;  %s429_s0 = inlined_call_operand.hbm [shape: bf16[32,128], index: 0, kind: input, shape index: {}]   ;;  %s430_s1 = inlined_call_operand.hbm [shape: bf16[128,128], index: 1, kind: input, shape index: {}]   ;;  %s431_s2 = inlined_call_operand.vmem [shape: f32[1,128], index: 2, kind: input, shape index: {}]   ;;  %s432_s3 = inlined_call_operand.hbm [shape: f32[32,128], index: 3, kind: output, shape index: {}]  }
   0x1   :  { %9 = vsyncpa [#allocation7], 0 }
   0x2   :  { %10 = vsyncpa [#allocation5], 0  ;;  %s363_s12 = smov [#allocation3]   ;;  %s291_s16 = scalar_lea.hbm %s429_s0, 256 }
   0x3   :  { %s16_s13 = sshll.u32 %s363_s12, 4  ;;  %p292_p0 = scmp.ne.s32.totalorder %s429_s0, %s291_s16  ;;  %s17_s13 = int_to_ptr.vmem [resolvable:$true] %s16_s13 }
   0x4   :  { %p295_p1 = scmp.lt.u32.totalorder %s291_s16, %s429_s0 }
   0x6   :  { %p297_p2 = pnand %p295_p1, %p292_p0 }
   0x8   :  { %300 = shalt.err (!%p297_p2)
}
   0x9   :  { %s301_s21 = scalar_lea.vmem %s17_s13, 256  ;;  %p306_p4 = scmp.lt.s32.totalorder %s17_s13, %s17_s13 }
   0xa   :  { %p302_p3 = scmp.ne.s32.totalorder %s17_s13, %s301_s21  ;;  %p307_p5 = scmp.lt.s32.totalorder %s301_s21, %s301_s21 }
   0xc   :  { %p308_p6 = por %p307_p5, %p306_p4 }
   0xe   :  { %p309_p7 = pnand %p308_p6, %p302_p3 }
  0x10   :  { %312 = shalt.err (!%p309_p7)
}
  0x11   :  { %s364_s22 = smov 64   ;;  %s365_s23 = smov 4  }
  0x12   :  { %22 = dma.hbm_to_vmem [thread:$0]  %s429_s0, 256, %s17_s13, [#allocation4], %s364_s22, %s364_s22, %s365_s23  }
  0x13   :  { %s366_s26 = smov [#allocation6]   ;;  %s313_s30 = scalar_lea.hbm %s430_s1, 1024 }
  0x14   :  { %s28_s27 = sshll.u32 %s366_s26, 4  ;;  %p314_p8 = scmp.ne.s32.totalorder %s430_s1, %s313_s30  ;;  %s29_s27 = int_to_ptr.vmem [resolvable:$true] %s28_s27 }
  0x15   :  { %p317_p9 = scmp.lt.u32.totalorder %s313_s30, %s430_s1 }
  0x17   :  { %p319_p10 = pnand %p317_p9, %p314_p8 }
  0x19   :  { %322 = shalt.err (!%p319_p10)
}
  0x1a   :  { %s323_s8 = scalar_lea.vmem %s29_s27, 1024  ;;  %p328_p12 = scmp.lt.s32.totalorder %s29_s27, %s29_s27 }
  0x1b   :  { %p324_p11 = scmp.ne.s32.totalorder %s29_s27, %s323_s8  ;;  %p329_p13 = scmp.lt.s32.totalorder %s323_s8, %s323_s8 }
  0x1d   :  { %p330_p0 = por %p329_p13, %p328_p12 }
  0x1f   :  { %p331_p1 = pnand %p330_p0, %p324_p11 }
  0x21   :  { %334 = shalt.err (!%p331_p1)
}
  0x22   :  { %34 = dma.hbm_to_vmem [thread:$0]  %s430_s1, 1024, %s29_s27, [#allocation7], %s364_s22, %s364_s22, %s365_s23  }
  0x23   :  { %357 = dma.done.wait [#allocation4], 256  }
  0x24   :  { %358 = vsyncadd [#allocation4], 4294967040 }
  0x25   :  { %359 = dma.done.wait [#allocation7], 1024  }
  0x26   :  { %360 = vsyncadd [#allocation7], 4294966272  ;;  %v281_v0 = vld [vmem:[#allocation6] sm:$0xff]   ;;  %v282_v1 = vld [vmem:[#allocation6 + $0x8] sm:$0xff]   ;;  %s367_s11 = smov [#allocation8]  }
  0x27   :  { %254 = vmatprep.subr.bf16.mxu0 %v281_v0  ;;  %v283_v2 = vld [vmem:[#allocation6 + $0x10] sm:$0xff]   ;;  %v284_v3 = vld [vmem:[#allocation6 + $0x18] sm:$0xff]   ;;  %v285_v5 = vld [vmem:[#allocation6 + $0x20] sm:$0xff]   ;;  %s220_s12 = sshll.u32 %s367_s11, 4  ;;  %s221_s12 = int_to_ptr.vmem [resolvable:$true] %s220_s12 }
  0x28   :  { %255 = vmatpush3.bf16.msra.mxu0 %v281_v0  ;;  %v289_v4 = vld [vmem:[#allocation3] sm:$0xff]   ;;  %v286_v6 = vld [vmem:[#allocation6 + $0x28] sm:$0xff]   ;;  %v288_v8 = vld [vmem:[#allocation6 + $0x38] sm:$0xff]   ;;  %s335_s13 = scalar_lea.vmem %s221_s12, 512  ;;  %p340_p3 = scmp.lt.s32.totalorder %s221_s12, %s221_s12 }
  0x29   :  { %256 = vmatprep.subr.bf16.mxu0 %v282_v1  ;;  %270 = vmatprep.mubr.bf16.mxu0 %v289_v4  ;;  %v287_v7 = vld [vmem:[#allocation6 + $0x30] sm:$0xff]   ;;  %v290_v9 = vld [vmem:[#allocation3 + $0x8] sm:$0xff]   ;;  %p336_p2 = scmp.ne.s32.totalorder %s221_s12, %s335_s13  ;;  %p341_p4 = scmp.lt.s32.totalorder %s335_s13, %s335_s13 }
  0x2a   :  { %v243_v10 = vld [vmem:[%s431_s2] ss:$0 sm:$0xff] }
  0x2b   :  { %p342_p5 = por %p341_p4, %p340_p3 }
  0x2c   :  { %257 = vmatpush3.bf16.msra.mxu0 %v282_v1 }
  0x2d   :  { %258 = vmatprep.subr.bf16.mxu0 %v283_v2  ;;  %p343_p6 = pnand %p342_p5, %p336_p2 }
  0x30   :  { %259 = vmatpush3.bf16.msra.mxu0 %v283_v2 }
  0x31   :  { %260 = vmatprep.subr.bf16.mxu0 %v284_v3 }
  0x34   :  { %261 = vmatpush3.bf16.msra.mxu0 %v284_v3 }
  0x35   :  { %262 = vmatprep.subr.bf16.mxu0 %v285_v5 }
  0x38   :  { %263 = vmatpush3.bf16.msra.mxu0 %v285_v5 }
  0x39   :  { %264 = vmatprep.subr.bf16.mxu0 %v286_v6 }
  0x3c   :  { %265 = vmatpush3.bf16.msra.mxu0 %v286_v6 }
  0x3d   :  { %266 = vmatprep.subr.bf16.mxu0 %v287_v7 }
  0x40   :  { %267 = vmatpush3.bf16.msra.mxu0 %v287_v7 }
  0x41   :  { %268 = vmatprep.subr.bf16.mxu0 %v288_v8 }
  0x44   :  { %269 = vmatpush3.bf16.msra.mxu0 %v288_v8 }
  0x47   :  { %271 = vmatmul.mubr.bf16.vlgmr.msra.gmra.mrb[0].mxu0 %v290_v9 }
 0x11a   :  { %v272_v11 = vpop.f32.mrb[0].mxu0 }
 0x11b   :  { %v209_v12 = vadd.f32 %v272_v11, %v243_v10  ;;  %v170_v13 = vpop.f32.mrb[1].mxu0 }
 0x11c   :  { %v207_v14 = vadd.f32 %v243_v10, %v170_v13  ;;  %v273_v15 = vpop.f32.mrb[2].mxu0 }
 0x11d   :  { %213 = vst [vmem:[#allocation8 + $0x10] sm:$0xff] %v209_v12  ;;  %v210_v16 = vadd.f32 %v273_v15, %v243_v10  ;;  %v173_v17 = vpop.f32.mrb[3].mxu0 }
 0x11e   :  { %211 = vst [vmem:[#allocation8] sm:$0xff] %v207_v14  ;;  %v208_v18 = vadd.f32 %v243_v10, %v173_v17 }
 0x11f   :  { %214 = vst [vmem:[#allocation8 + $0x18] sm:$0xff] %v210_v16 }
 0x120   :  { %212 = vst [vmem:[#allocation8 + $0x8] sm:$0xff] %v208_v18 }
 0x121   :  { %346 = shalt.err (!%p343_p6)
}
 0x122   :  { %s347_s15 = scalar_lea.hbm %s432_s3, 512 }
 0x123   :  { %p348_p7 = scmp.ne.s32.totalorder %s432_s3, %s347_s15  ;;  %p351_p8 = scmp.lt.u32.totalorder %s347_s15, %s432_s3 }
 0x125   :  { %p353_p9 = pnand %p351_p8, %p348_p7 }
 0x127   :  { %356 = shalt.err (!%p353_p9)
}
 0x128   :  { %s368_s20 = smov 128   ;;  %s369_s21 = smov 8  }
 0x129   :  { %226 = dma.vmem_to_hbm [thread:$0]  %s221_s12, 512, %s432_s3, [#allocation5], %s368_s20, %s368_s20, %s369_s21  }
 0x12a   :  { %361 = dma.done.wait [#allocation5], 512  }
 0x12b   :  { %362 = vsyncadd [#allocation5], 4294966784 }
 0x12c   :  { %230 = vsyncpa [#allocation4], 1 }
 0x12d   :  { %231 = vsyncpa [#allocation7], 1 }
 0x12e   :  { %232 = vsyncpa [#allocation5], 1 }

</bundles_post_ra>
